<compile_context>
chip_gen: v7x
topology: tpu7x:2x2x1
jax: 0.10.0
libtpu: 0.0.40
codegen_flags: <defaults>
</compile_context>

<pallas_src>
import math
from functools import partial

import jax
import jax.numpy as jnp
from jax.experimental import pallas as pl
from jax.experimental.pallas import tpu as pltpu

SIG_SCALE = 4.0 / 180.0 * math.pi   # folded sigmoid(y) * 4/180*pi
SIG_SHIFT = 2.0 / 180.0 * math.pi   # folded + 2/180*pi


def _round_up(x, m):
    return (x + m - 1) // m * m


def mlp0_kernel(x_ref, w1_ref, b1_ref, w2_ref, b2_ref, w3_ref, b3_ref, o_ref):
    # x arrives f32 straight from HBM; cast to bf16 on the VPU for the MXU.
    x = x_ref[...].astype(jnp.bfloat16)                              # (tm, 620)

    # fc1 + ReLU   (bf16 MXU, f32 accumulate)
    h1 = jnp.dot(x, w1_ref[...], preferred_element_type=jnp.float32) + b1_ref[...]
    h1 = jnp.maximum(h1, 0.0).astype(jnp.bfloat16)                   # (tm, 128)

    # fc2 + ReLU
    h2 = jnp.dot(h1, w2_ref[...], preferred_element_type=jnp.float32) + b2_ref[...]
    h2 = jnp.maximum(h2, 0.0).astype(jnp.bfloat16)                   # (tm, 128)

    # fc3
    y = jnp.dot(h2, w3_ref[...], preferred_element_type=jnp.float32) + b3_ref[...]

    # sigmoid(y) * 4/180*pi + 2/180*pi.  Clamp avoids exp(-y) overflow for very
    # negative y (sigmoid(-30) ~ 1e-13, far below tolerance).  exp + approx
    # reciprocal both go to the EUP slot.
    y = jnp.maximum(y, -30.0)
    sig = pl.reciprocal(1.0 + jnp.exp(-y), approx=True)
    o_ref[...] = (sig * SIG_SCALE + SIG_SHIFT).astype(o_ref.dtype)


def prepare_params(w1, b1, w2, b2, w3, b3):
    """One-time weight prep: pad hidden dim (100->128) with zeros, cast weights
    to bf16 and biases to f32.  Call once, OUTSIDE the jitted forward.

    Zero padding keeps the math exact: padded hidden lanes stay exactly 0
    through bias + ReLU and hit zero rows of the next weight.
    """
    hid = w1.shape[1]
    hid_p = _round_up(hid, 128)

    def pad2(a, rows, cols):
        return jnp.pad(a, ((0, rows - a.shape[0]), (0, cols - a.shape[1])))

    w1p = pad2(w1, w1.shape[0], hid_p).astype(jnp.bfloat16)   # (620, 128)
    w2p = pad2(w2, hid_p, hid_p).astype(jnp.bfloat16)         # (128, 128)
    w3p = pad2(w3, hid_p, w3.shape[1]).astype(jnp.bfloat16)   # (128, 620)
    b1p = pad2(b1, 1, hid_p).astype(jnp.float32)              # (1, 128)
    b2p = pad2(b2, 1, hid_p).astype(jnp.float32)              # (1, 128)
    b3p = b3.astype(jnp.float32)                              # (1, 620)
    return w1p, b1p, w2p, b2p, w3p, b3p


@partial(jax.jit, static_argnames=("block_m_max", "out_dtype"))
def mlp0_forward(x, w1p, b1p, w2p, b2p, w3p, b3p, *,
                 block_m_max=512, out_dtype=jnp.bfloat16):
    """x: (B, input_size) f32.  Weights from prepare_params (bf16, hidden padded)."""
    B, in_size = x.shape
    hid_p = w1p.shape[1]
    out_size = w3p.shape[1]

    # Adaptive batch tiling: one full-batch tile when it fits, otherwise the
    # fewest multiple-of-8 tiles (ragged last tile handled by Pallas OOB
    # masking -> no row padding, no row slicing, <~8 wasted rows per call).
    n_tiles = pl.cdiv(B, block_m_max)
    if n_tiles <= 1:
        block_m = B                                   # full dim is always legal
    else:
        block_m = _round_up(pl.cdiv(B, n_tiles), 8)
    grid = (pl.cdiv(B, block_m),)

    # Weights/biases stay VMEM-resident across all grid steps.
    resident = lambda shape: pl.BlockSpec(shape, lambda i: (0, 0))

    return pl.pallas_call(
        mlp0_kernel,
        out_shape=jax.ShapeDtypeStruct((B, out_size), out_dtype),
        grid=grid,
        in_specs=[
            pl.BlockSpec((block_m, in_size), lambda i: (i, 0)),   # x, f32, full last dim
            resident((in_size, hid_p)), resident((1, hid_p)),     # fc1
            resident((hid_p, hid_p)), resident((1, hid_p)),       # fc2
            resident((hid_p, out_size)), resident((1, out_size)), # fc3
        ],
        out_specs=pl.BlockSpec((block_m, out_size), lambda i: (i, 0)),
        compiler_params=pltpu.CompilerParams(
            dimension_semantics=("parallel",)),   # batch tiles shard across TCs on v7x
    )(x, w1p, b1p, w2p, b2p, w3p, b3p)


def init_params(key, input_size, hidden_size, output_size):
    """Deterministic init mimicking nn.Linear's uniform(-1/sqrt(fan_in), 1/sqrt(fan_in))."""
    ks = jax.random.split(key, 6)

    def linear(kw, kb, fan_in, fan_out):
        bound = 1.0 / math.sqrt(fan_in)
        w = jax.random.uniform(kw, (fan_in, fan_out), jnp.float32, -bound, bound)
        b = jax.random.uniform(kb, (1, fan_out), jnp.float32, -bound, bound)
        return w, b

    w1, b1 = linear(ks[0], ks[1], input_size, hidden_size)
    w2, b2 = linear(ks[2], ks[3], hidden_size, hidden_size)
    w3, b3 = linear(ks[4], ks[5], hidden_size, output_size)
    return w1, b1, w2, b2, w3, b3


if __name__ == "__main__":
    input_size, hidden_size, output_size = 620, 100, 620
    batch = 8

    key = jax.random.PRNGKey(0)
    kx, kp = jax.random.split(key)

    x = jax.random.normal(kx, (batch, input_size), dtype=jnp.float32)
    params = init_params(kp, input_size, hidden_size, output_size)

    # One-time weight prep (pad hidden 100->128, cast bf16) outside the jit.
    prepped = prepare_params(*params)
    prepped = jax.block_until_ready(prepped)

    out = mlp0_forward(x, *prepped)
    out = jax.block_until_ready(out)

    # Full-precision JAX reference (kernel uses bf16 matmuls, bf16 output and an
    # approx reciprocal; outputs lie in [2*pi/180, 6*pi/180] so atol=2e-3 is generous).
    w1, b1, w2, b2, w3, b3 = params
    h1 = jnp.maximum(x @ w1 + b1, 0.0)
    h2 = jnp.maximum(h1 @ w2 + b2, 0.0)
    y = h2 @ w3 + b3
    ref = jax.nn.sigmoid(y) * 4.0 / 180.0 * math.pi + 2.0 / 180.0 * math.pi

    assert out.shape == (batch, output_size)
    assert bool(jnp.all(jnp.abs(out.astype(jnp.float32) - ref) < 2e-3))

    print("KERNEL_OK")
</pallas_src>

<mosaic_0001>
module attributes {stable_mosaic.version = 11 : i64} {
  func.func @mlp0_kernel(%arg0: i32, %arg1: memref<8x620xf32, #tpu.memory_space<vmem>>, %arg2: memref<620x128xbf16, #tpu.memory_space<vmem>>, %arg3: memref<1x128xf32, #tpu.memory_space<vmem>>, %arg4: memref<128x128xbf16, #tpu.memory_space<vmem>>, %arg5: memref<1x128xf32, #tpu.memory_space<vmem>>, %arg6: memref<128x620xbf16, #tpu.memory_space<vmem>>, %arg7: memref<1x620xf32, #tpu.memory_space<vmem>>, %arg8: memref<8x620xbf16, #tpu.memory_space<vmem>>) attributes {dimension_semantics = [#tpu.dimension_semantics<parallel>], iteration_bounds = array<i64: 1>, scalar_prefetch = 0 : i64, scratch_operands = 0 : i64, tpu.core_type = #tpu.core_type<tc>, window_params = [{transform_indices = @transform_0, window_bounds = array<i64: 8, 620>}, {pipeline_mode = #tpu.pipeline_mode<synchronous>, transform_indices = @transform_1, window_bounds = array<i64: 620, 128>}, {pipeline_mode = #tpu.pipeline_mode<synchronous>, transform_indices = @transform_2, window_bounds = array<i64: 1, 128>}, {pipeline_mode = #tpu.pipeline_mode<synchronous>, transform_indices = @transform_3, window_bounds = array<i64: 128, 128>}, {pipeline_mode = #tpu.pipeline_mode<synchronous>, transform_indices = @transform_4, window_bounds = array<i64: 1, 128>}, {pipeline_mode = #tpu.pipeline_mode<synchronous>, transform_indices = @transform_5, window_bounds = array<i64: 128, 620>}, {pipeline_mode = #tpu.pipeline_mode<synchronous>, transform_indices = @transform_6, window_bounds = array<i64: 1, 620>}, {transform_indices = @transform_7, window_bounds = array<i64: 8, 620>}]} {
    %c0 = arith.constant 0 : index
    %c0_0 = arith.constant 0 : index
    %0 = vector.load %arg1[%c0, %c0_0] : memref<8x620xf32, #tpu.memory_space<vmem>>, vector<8x620xf32>
    %1 = arith.truncf %0 : vector<8x620xf32> to vector<8x620xbf16>
    %c0_1 = arith.constant 0 : index
    %c0_2 = arith.constant 0 : index
    %2 = vector.load %arg2[%c0_1, %c0_2] : memref<620x128xbf16, #tpu.memory_space<vmem>>, vector<620x128xbf16>
    %cst = arith.constant dense<0.000000e+00> : vector<8x128xf32>
    %3 = tpu.matmul %1, %2, %cst {dimension_numbers = #tpu.dot_dimension_numbers<[1], [0], [0], [1], [0, 0, 1, 1], [], []>} : vector<8x620xbf16>, vector<620x128xbf16>, vector<8x128xf32> -> vector<8x128xf32>
    %c0_3 = arith.constant 0 : index
    %c0_4 = arith.constant 0 : index
    %4 = vector.load %arg3[%c0_3, %c0_4] : memref<1x128xf32, #tpu.memory_space<vmem>>, vector<1x128xf32>
    %5 = vector.broadcast %4 : vector<1x128xf32> to vector<8x128xf32>
    %6 = arith.addf %3, %5 : vector<8x128xf32>
    %cst_5 = arith.constant 0.000000e+00 : f32
    %7 = vector.broadcast %cst_5 : f32 to vector<8x128xf32>
    %8 = arith.maximumf %6, %7 : vector<8x128xf32>
    %9 = arith.truncf %8 : vector<8x128xf32> to vector<8x128xbf16>
    %c0_6 = arith.constant 0 : index
    %c0_7 = arith.constant 0 : index
    %10 = vector.load %arg4[%c0_6, %c0_7] : memref<128x128xbf16, #tpu.memory_space<vmem>>, vector<128x128xbf16>
    %cst_8 = arith.constant dense<0.000000e+00> : vector<8x128xf32>
    %11 = tpu.matmul %9, %10, %cst_8 {dimension_numbers = #tpu.dot_dimension_numbers<[1], [0], [0], [1], [0, 0, 1, 1], [], []>} : vector<8x128xbf16>, vector<128x128xbf16>, vector<8x128xf32> -> vector<8x128xf32>
    %c0_9 = arith.constant 0 : index
    %c0_10 = arith.constant 0 : index
    %12 = vector.load %arg5[%c0_9, %c0_10] : memref<1x128xf32, #tpu.memory_space<vmem>>, vector<1x128xf32>
    %13 = vector.broadcast %12 : vector<1x128xf32> to vector<8x128xf32>
    %14 = arith.addf %11, %13 : vector<8x128xf32>
    %cst_11 = arith.constant 0.000000e+00 : f32
    %15 = vector.broadcast %cst_11 : f32 to vector<8x128xf32>
    %16 = arith.maximumf %14, %15 : vector<8x128xf32>
    %17 = arith.truncf %16 : vector<8x128xf32> to vector<8x128xbf16>
    %c0_12 = arith.constant 0 : index
    %c0_13 = arith.constant 0 : index
    %18 = vector.load %arg6[%c0_12, %c0_13] : memref<128x620xbf16, #tpu.memory_space<vmem>>, vector<128x620xbf16>
    %cst_14 = arith.constant dense<0.000000e+00> : vector<8x620xf32>
    %19 = tpu.matmul %17, %18, %cst_14 {dimension_numbers = #tpu.dot_dimension_numbers<[1], [0], [0], [1], [0, 0, 1, 1], [], []>} : vector<8x128xbf16>, vector<128x620xbf16>, vector<8x620xf32> -> vector<8x620xf32>
    %c0_15 = arith.constant 0 : index
    %c0_16 = arith.constant 0 : index
    %20 = vector.load %arg7[%c0_15, %c0_16] : memref<1x620xf32, #tpu.memory_space<vmem>>, vector<1x620xf32>
    %21 = vector.broadcast %20 : vector<1x620xf32> to vector<8x620xf32>
    %22 = arith.addf %19, %21 : vector<8x620xf32>
    %cst_17 = arith.constant -3.000000e+01 : f32
    %23 = vector.broadcast %cst_17 : f32 to vector<8x620xf32>
    %24 = arith.maximumf %22, %23 : vector<8x620xf32>
    %cst_18 = arith.constant 0.000000e+00 : f32
    %25 = vector.broadcast %cst_18 : f32 to vector<8x620xf32>
    %26 = arith.subf %25, %24 : vector<8x620xf32>
    %27 = math.exp %26 : vector<8x620xf32>
    %cst_19 = arith.constant 1.000000e+00 : f32
    %28 = vector.broadcast %cst_19 : f32 to vector<8x620xf32>
    %29 = arith.addf %28, %27 : vector<8x620xf32>
    %30 = tpu.reciprocal %29 {approx = true} : vector<8x620xf32> -> vector<8x620xf32>
    %cst_20 = arith.constant 0.0698131695 : f32
    %31 = vector.broadcast %cst_20 : f32 to vector<8x620xf32>
    %32 = arith.mulf %30, %31 : vector<8x620xf32>
    %cst_21 = arith.constant 0.0349065848 : f32
    %33 = vector.broadcast %cst_21 : f32 to vector<8x620xf32>
    %34 = arith.addf %32, %33 : vector<8x620xf32>
    %35 = arith.truncf %34 : vector<8x620xf32> to vector<8x620xbf16>
    %c0_22 = arith.constant 0 : index
    %c0_23 = arith.constant 0 : index
    %36 = vector.load %arg8[%c0_22, %c0_23] : memref<8x620xbf16, #tpu.memory_space<vmem>>, vector<8x620xbf16>
    tpu.vector_store %arg8[%c0_22, %c0_23], %35 {strides = array<i32>} : memref<8x620xbf16, #tpu.memory_space<vmem>>, vector<8x620xbf16>,
    return
  }
  func.func @transform_0(%arg0: i32) -> (i32, i32) {
    %c0_i32 = arith.constant 0 : i32
    %c0_i32_0 = arith.constant 0 : i32
    return %arg0, %c0_i32 : i32, i32
  }
  func.func @transform_1(%arg0: i32) -> (i32, i32) {
    %c0_i32 = arith.constant 0 : i32
    %c0_i32_0 = arith.constant 0 : i32
    %c0_i32_1 = arith.constant 0 : i32
    return %c0_i32, %c0_i32_0 : i32, i32
  }
  func.func @transform_2(%arg0: i32) -> (i32, i32) {
    %c0_i32 = arith.constant 0 : i32
    %c0_i32_0 = arith.constant 0 : i32
    %c0_i32_1 = arith.constant 0 : i32
    return %c0_i32, %c0_i32_0 : i32, i32
  }
  func.func @transform_3(%arg0: i32) -> (i32, i32) {
    %c0_i32 = arith.constant 0 : i32
    %c0_i32_0 = arith.constant 0 : i32
    %c0_i32_1 = arith.constant 0 : i32
    return %c0_i32, %c0_i32_0 : i32, i32
  }
  func.func @transform_4(%arg0: i32) -> (i32, i32) {
    %c0_i32 = arith.constant 0 : i32
    %c0_i32_0 = arith.constant 0 : i32
    %c0_i32_1 = arith.constant 0 : i32
    return %c0_i32, %c0_i32_0 : i32, i32
  }
  func.func @transform_5(%arg0: i32) -> (i32, i32) {
    %c0_i32 = arith.constant 0 : i32
    %c0_i32_0 = arith.constant 0 : i32
    %c0_i32_1 = arith.constant 0 : i32
    return %c0_i32, %c0_i32_0 : i32, i32
  }
  func.func @transform_6(%arg0: i32) -> (i32, i32) {
    %c0_i32 = arith.constant 0 : i32
    %c0_i32_0 = arith.constant 0 : i32
    %c0_i32_1 = arith.constant 0 : i32
    return %c0_i32, %c0_i32_0 : i32, i32
  }
  func.func @transform_7(%arg0: i32) -> (i32, i32) {
    %c0_i32 = arith.constant 0 : i32
    %c0_i32_0 = arith.constant 0 : i32
    return %arg0, %c0_i32 : i32, i32
  }
}

</mosaic_0001>

<bundles_post_ra>
// kernel: mlp0_forward.1
= control target key start
LH: loop header
LB: loop body
LE: loop exit
PB: predicated region body
PF: predicated region fallthrough
CT: control target
= control target key end

     0   :  { %v1458_v35 = vmov 0.0   ;;  %vm1459_vm0 = vmmov 0   ;;  %vm360_vm1 = vcmask 1045504   ;;  %vm356_vm2 = vcmask 883712   ;;  %s1828_s0 = inlined_call_operand.vmem [shape: f32[8,620], index: 0, kind: input, shape index: {}]   ;;  %s1829_s1 = inlined_call_operand.vmem [shape: bf16[620,128], index: 1, kind: input, shape index: {}]   ;;  %s1830_s2 = inlined_call_operand.vmem [shape: f32[1,128], index: 2, kind: input, shape index: {}]   ;;  %s1831_s3 = inlined_call_operand.vmem [shape: bf16[128,128], index: 3, kind: input, shape index: {}]   ;;  %s1832_s4 = inlined_call_operand.vmem [shape: f32[1,128], index: 4, kind: input, shape index: {}]   ;;  %s1833_s5 = inlined_call_operand.vmem [shape: bf16[128,620], index: 5, kind: input, shape index: {}]   ;;  %s1834_s6 = inlined_call_operand.vmem [shape: f32[1,620], index: 6, kind: input, shape index: {}]   ;;  %s1835_s7 = inlined_call_operand.hbm [shape: bf16[8,620], index: 7, kind: output, shape index: {}]  }
   0x1   :  { %v1311_v0 = vld [vmem:[%s1829_s1 + $0x40] sm:$0xff]   ;;  %v1315_v4 = vld [vmem:[%s1829_s1 + $0x48] sm:$0xff]   ;;  %v1319_v8 = vld [vmem:[%s1829_s1 + $0x50] sm:$0xff]  }
   0x2   :  { %v1312_v1 = vld [vmem:[%s1829_s1] sm:$0xff]   ;;  %1179 = vmatprep.subr.bf16.mxu0 %v1311_v0  ;;  %v1316_v5 = vld [vmem:[%s1829_s1 + $0x8] sm:$0xff]   ;;  %v1320_v9 = vld [vmem:[%s1829_s1 + $0x10] sm:$0xff]  }
   0x3   :  { %v1313_v2 = vld [vmem:[%s1829_s1 + $0xc0] sm:$0xff]   ;;  %1180 = vmatpush3.bf16.msra.mxu0 %v1312_v1  ;;  %v1317_v6 = vld [vmem:[%s1829_s1 + $0xc8] sm:$0xff]   ;;  %v1321_v10 = vld [vmem:[%s1829_s1 + $0xd0] sm:$0xff]  }
   0x4   :  { %v1314_v3 = vld [vmem:[%s1829_s1 + $0x80] sm:$0xff]   ;;  %1201 = vmatprep.subr.bf16.mxu1 %v1313_v2  ;;  %1181 = vmatprep.subr.bf16.mxu0 %v1315_v4  ;;  %v1318_v7 = vld [vmem:[%s1829_s1 + $0x88] sm:$0xff]   ;;  %v1322_v11 = vld [vmem:[%s1829_s1 + $0x90] sm:$0xff]  }
   0x5   :  { %1202 = vmatpush3.bf16.msra.mxu1 %v1314_v3  ;;  %v1323_v12 = vld [vmem:[%s1829_s1 + $0x58] sm:$0xff]   ;;  %v1327_v16 = vld [vmem:[%s1829_s1 + $0x60] sm:$0xff]   ;;  %v1331_v20 = vld [vmem:[%s1829_s1 + $0x68] sm:$0xff]  }
   0x6   :  { %1203 = vmatprep.subr.bf16.mxu1 %v1317_v6  ;;  %v1324_v13 = vld [vmem:[%s1829_s1 + $0x18] sm:$0xff]   ;;  %v1328_v17 = vld [vmem:[%s1829_s1 + $0x20] sm:$0xff]   ;;  %v1332_v21 = vld [vmem:[%s1829_s1 + $0x28] sm:$0xff]  }
   0x7   :  { %1182 = vmatpush3.bf16.msra.mxu0 %v1316_v5  ;;  %v1325_v14 = vld [vmem:[%s1829_s1 + $0xd8] sm:$0xff]   ;;  %v1329_v18 = vld [vmem:[%s1829_s1 + $0xe0] sm:$0xff]   ;;  %v1333_v22 = vld [vmem:[%s1829_s1 + $0xe8] sm:$0xff]  }
   0x8   :  { %1183 = vmatprep.subr.bf16.mxu0 %v1319_v8  ;;  %v1326_v15 = vld [vmem:[%s1829_s1 + $0x98] sm:$0xff]   ;;  %v1330_v19 = vld [vmem:[%s1829_s1 + $0xa0] sm:$0xff]   ;;  %v1334_v23 = vld [vmem:[%s1829_s1 + $0xa8] sm:$0xff]  }
   0x9   :  { %1204 = vmatpush3.bf16.msra.mxu1 %v1318_v7  ;;  %v1335_v24 = vld [vmem:[%s1829_s1 + $0x70] sm:$0xff]   ;;  %v1339_v28 = vld [vmem:[%s1829_s1 + $0x78] sm:$0xff]   ;;  %v29_v31 = vld [vmem:[%s1828_s0 + $0x8] sm:$0xff] }
   0xa   :  { %1205 = vmatprep.subr.bf16.mxu1 %v1321_v10  ;;  %v1336_v25 = vld [vmem:[%s1829_s1 + $0x30] sm:$0xff]   ;;  %v1340_v29 = vld [vmem:[%s1829_s1 + $0x38] sm:$0xff]   ;;  %v34_v32 = vpack.c.bf16 %v29_v31, %v29_v31  ;;  %v28_v34 = vld [vmem:[%s1828_s0] sm:$0xff] }
   0xb   :  { %1184 = vmatpush3.bf16.msra.mxu0 %v1320_v9  ;;  %v1337_v26 = vld [vmem:[%s1829_s1 + $0xf0] sm:$0xff]   ;;  %v1341_v30 = vld [vmem:[%s1829_s1 + $0xf8] sm:$0xff]   ;;  %v33_v37 = vpack.c.bf16 %v28_v34, %v28_v34  ;;  %v1343_v39 = vld [vmem:[%s1829_s1 + $0x100] sm:$0xff]  }
   0xc   :  { %1185 = vmatprep.subr.bf16.mxu0 %v1323_v12  ;;  %v1338_v27 = vld [vmem:[%s1829_s1 + $0xb0] sm:$0xff]   ;;  %v1342_v33 = vld [vmem:[%s1829_s1 + $0xb8] sm:$0xff]   ;;  %396 = vmatprep.mubr.bf16.mxu0 %v34_v32  ;;  %v1344_v42 = vld [vmem:[%s1829_s1 + $0x108] sm:$0xff]  }
   0xd   :  { %1206 = vmatpush3.bf16.msra.mxu1 %v1322_v11  ;;  %v31_v36 = vld [vmem:[%s1828_s0 + $0x18] sm:$0xff]  ;;  %v30_v40 = vld [vmem:[%s1828_s0 + $0x10] sm:$0xff]  ;;  %v1347_v45 = vld [vmem:[%s1829_s1 + $0x120] sm:$0xff]  }
   0xe   :  { %1207 = vmatprep.subr.bf16.mxu1 %v1325_v14  ;;  %v36_v38 = vpack.c.bf16 %v31_v36, %v31_v36  ;;  %v35_v41 = vpack.c.bf16 %v30_v40, %v30_v40  ;;  %v1345_v43 = vld [vmem:[%s1829_s1 + $0x110] sm:$0xff]   ;;  %v1346_v44 = vld [vmem:[%s1829_s1 + $0x118] sm:$0xff]   ;;  %v1348_v46 = vld [vmem:[%s1829_s1 + $0x128] sm:$0xff]  }
   0xf   :  { %1186 = vmatpush3.bf16.msra.mxu0 %v1324_v13  ;;  %v1349_v47 = vld [vmem:[%s1829_s1 + $0x130] sm:$0x3f]   ;;  %v32_v48 = vld [vmem:[%s1828_s0 + $0x20] sm:$0xff] }
  0x10   :  { %1187 = vmatprep.subr.bf16.mxu0 %v1327_v16  ;;  %436 = vmatprep.mubr.bf16.mxu1 %v36_v38  ;;  %v362_v49 = vsel %vm360_vm1, %v1349_v47, 0  ;;  %v37_v50 = vpack.c.bf16 %v32_v48, %v32_v48 }
  0x11   :  { %1208 = vmatpush3.bf16.msra.mxu1 %v1326_v15 }
  0x12   :  { %1209 = vmatprep.subr.bf16.mxu1 %v1329_v18 }
  0x13   :  { %1188 = vmatpush3.bf16.msra.mxu0 %v1328_v17 }
  0x14   :  { %1189 = vmatprep.subr.bf16.mxu0 %v1331_v20 }
  0x15   :  { %1210 = vmatpush3.bf16.msra.mxu1 %v1330_v19 }
  0x16   :  { %1211 = vmatprep.subr.bf16.mxu1 %v1333_v22 }
  0x17   :  { %1190 = vmatpush3.bf16.msra.mxu0 %v1332_v21 }
  0x18   :  { %1191 = vmatprep.subr.bf16.mxu0 %v1335_v24 }
  0x19   :  { %1212 = vmatpush3.bf16.msra.mxu1 %v1334_v23 }
  0x1a   :  { %1213 = vmatprep.subr.bf16.mxu1 %v1337_v26 }
  0x1b   :  { %1192 = vmatpush3.bf16.msra.mxu0 %v1336_v25 }
  0x1c   :  { %1193 = vmatprep.subr.bf16.mxu0 %v1339_v28 }
  0x1d   :  { %1214 = vmatpush3.bf16.msra.mxu1 %v1338_v27 }
  0x1e   :  { %1215 = vmatprep.subr.bf16.mxu1 %v1341_v30 }
  0x1f   :  { %1194 = vmatpush3.bf16.msra.mxu0 %v1340_v29 }
  0x20   :  { %1249 = vmatprep.subr.bf16.mxu0 %v1458_v35 }
  0x21   :  { %1216 = vmatpush3.bf16.msra.mxu1 %v1342_v33 }
  0x22   :  { %397 = vmatmul.mubr.bf16.vlgmr.msra.gmra.mrb[0].mxu0 %v33_v37  ;;  %1267 = vmatprep.subr.bf16.mxu1 %v1458_v35 }
  0x23   :  { %1250 = vmatpush3.bf16.msra.mxu0 %v1343_v39  ;;  %1263 = vmatprep.mubr.msk.bf16.mxu0 %vm1459_vm0, %v1458_v35 }
  0x24   :  { %437 = vmatmul.mubr.bf16.vlgmr.msra.gmra.mrb[0].mxu1 %v35_v41  ;;  %1251 = vmatprep.subr.bf16.mxu0 %v1458_v35 }
  0x25   :  { %1283 = vmatprep.mubr.msk.bf16.mxu1 %vm1459_vm0, %v1458_v35 }
  0x27   :  { %1252 = vmatpush3.bf16.msra.mxu0 %v1344_v42 }
  0x28   :  { %1253 = vmatprep.subr.bf16.mxu0 %v1458_v35 }
  0x2b   :  { %1254 = vmatpush3.bf16.msra.mxu0 %v1345_v43 }
  0x2c   :  { %1255 = vmatprep.subr.bf16.mxu0 %v1458_v35 }
  0x2f   :  { %1256 = vmatpush3.bf16.msra.mxu0 %v1346_v44 }
  0x30   :  { %1257 = vmatprep.subr.bf16.mxu0 %v1458_v35 }
  0x33   :  { %1258 = vmatpush3.bf16.msra.mxu0 %v1347_v45 }
  0x34   :  { %1259 = vmatprep.subr.bf16.mxu0 %v1458_v35 }
  0x37   :  { %1260 = vmatpush3.bf16.msra.mxu0 %v1348_v46 }
  0x38   :  { %1261 = vmatprep.subr.bf16.mxu0 %v1458_v35 }
  0x3b   :  { %1262 = vmatpush3.bf16.msra.mxu0 %v362_v49 }
  0x3c   :  { %12 = vsyncpa [#allocation3], 0  ;;  %v1350_v51 = vld [vmem:[%s1831_s3] sm:$0xff]   ;;  %v1351_v52 = vld [vmem:[%s1831_s3 + $0x8] sm:$0xff]   ;;  %v1460_v48 = vmov 0   ;;  %vm1067_vm3 = vcmask 879616  }
  0x3d   :  { %1268 = vmatpush3.bf16.msra.mxu1 %v1350_v51  ;;  %v1352_v53 = vld [vmem:[%s1831_s3 + $0x10] sm:$0xff]   ;;  %v1353_v54 = vld [vmem:[%s1831_s3 + $0x18] sm:$0xff]   ;;  %v1354_v55 = vld [vmem:[%s1831_s3 + $0x20] sm:$0xff]  }
  0x3e   :  { %1264 = vmatmul.mubr.msk.bf16.vlgmr.msra.gmra.mrb[4].mxu0 %vm356_vm2, %v37_v50  ;;  %1269 = vmatprep.subr.bf16.mxu1 %v1458_v35  ;;  %v1355_v56 = vld [vmem:[%s1831_s3 + $0x28] sm:$0xff]   ;;  %v1356_v57 = vld [vmem:[%s1831_s3 + $0x30] sm:$0xff]   ;;  %v1357_v58 = vld [vmem:[%s1831_s3 + $0x38] sm:$0xff]  }
  0x3f   :  { %v1358_v59 = vld [vmem:[%s1833_s5] ss:$20 sps:$4 sm:$0xff]   ;;  %v1360_v60 = vld [vmem:[%s1833_s5 + $0x4] ss:$20 sps:$4 sm:$0xff]   ;;  %v1364_v63 = vld [vmem:[%s1833_s5 + $0x28] ss:$20 sps:$4 sm:$0xff]   ;;  %914 = vmatprep.mubr.bf16.mxu0 %v1460_v48 }
  0x40   :  { %v1363_v61 = vld [vmem:[%s1833_s5 + $0xc] ss:$20 sps:$4 sm:$0xff]   ;;  %882 = vmatprep.subr.bf16.mxu0 %v1360_v60  ;;  %v1372_v0 = vld [vmem:[%s1833_s5 + $0x54] ss:$20 sps:$4 sm:$0xff]   ;;  %v1370_v1 = vld [vmem:[%s1833_s5 + $0x50] ss:$20 sps:$4 sm:$0xff]  }
  0x41   :  { %1270 = vmatpush3.bf16.msra.mxu1 %v1351_v52  ;;  %v1366_v62 = vld [vmem:[%s1833_s5 + $0x2c] ss:$20 sps:$4 sm:$0xff]   ;;  %883 = vmatpush1.bf16.msra.mxu0 %v1358_v59  ;;  %v1378_v2 = vld [vmem:[%s1833_s5 + $0x7c] ss:$20 sps:$4 sm:$0xff]   ;;  %v1384_v4 = vld [vmem:[%s1833_s5 + $0xa4] ss:$20 sps:$4 sm:$0xff]  }
  0x42   :  { %1271 = vmatprep.subr.bf16.mxu1 %v1458_v35  ;;  %884 = vmatprep.subr.bf16.mxu0 %v1366_v62  ;;  %v1376_v3 = vld [vmem:[%s1833_s5 + $0x78] ss:$20 sps:$4 sm:$0xff]   ;;  %v1382_v5 = vld [vmem:[%s1833_s5 + $0xa0] ss:$20 sps:$4 sm:$0xff]   ;;  %v1388_v7 = vld [vmem:[%s1833_s5 + $0xc8] ss:$20 sps:$4 sm:$0xff]  }
  0x43   :  { %v1390_v6 = vld [vmem:[%s1833_s5 + $0xcc] ss:$20 sps:$4 sm:$0xff]   ;;  %v1396_v8 = vld [vmem:[%s1833_s5 + $0xf4] ss:$20 sps:$4 sm:$0xff]   ;;  %v1394_v9 = vld [vmem:[%s1833_s5 + $0xf0] ss:$20 sps:$4 sm:$0xff]  }
  0x44   :  { %v1083_v11 = vld [vmem:[%s1830_s2] ss:$0 sm:$0xff]  ;;  %v1361_v29 = vld [vmem:[%s1833_s5 + $0x8] ss:$20 sps:$4 sm:$0xff]   ;;  %v1367_v32 = vld [vmem:[%s1833_s5 + $0x30] ss:$20 sps:$4 sm:$0xff]  }
  0x45   :  { %1272 = vmatpush3.bf16.msra.mxu1 %v1352_v53  ;;  %885 = vmatpush1.bf16.msra.mxu0 %v1364_v63  ;;  %v1369_v31 = vld [vmem:[%s1833_s5 + $0x34] ss:$20 sps:$4 sm:$0xff]   ;;  %v1375_v33 = vld [vmem:[%s1833_s5 + $0x5c] ss:$20 sps:$4 sm:$0xff]   ;;  %v1373_v34 = vld [vmem:[%s1833_s5 + $0x58] ss:$20 sps:$4 sm:$0xff]  }
  0x46   :  { %1273 = vmatprep.subr.bf16.mxu1 %v1458_v35  ;;  %886 = vmatprep.subr.bf16.mxu0 %v1372_v0  ;;  %v1381_v36 = vld [vmem:[%s1833_s5 + $0x84] ss:$20 sps:$4 sm:$0xff]   ;;  %v1379_v37 = vld [vmem:[%s1833_s5 + $0x80] ss:$20 sps:$4 sm:$0xff]   ;;  %v1385_v39 = vld [vmem:[%s1833_s5 + $0xa8] ss:$20 sps:$4 sm:$0xff]  }
  0x47   :  { %v1387_v38 = vld [vmem:[%s1833_s5 + $0xac] ss:$20 sps:$4 sm:$0xff]   ;;  %v1393_v40 = vld [vmem:[%s1833_s5 + $0xd4] ss:$20 sps:$4 sm:$0xff]   ;;  %v1391_v41 = vld [vmem:[%s1833_s5 + $0xd0] ss:$20 sps:$4 sm:$0xff]  }
  0x48   :  { %v1399_v42 = vld [vmem:[%s1833_s5 + $0xfc] ss:$20 sps:$4 sm:$0xff]   ;;  %v1397_v43 = vld [vmem:[%s1833_s5 + $0xf8] ss:$20 sps:$4 sm:$0xff]   ;;  %v1403_v47 = vld [vmem:[%s1833_s5 + $0x120] ss:$20 sps:$4 sm:$0xff]  }
  0x49   :  { %1274 = vmatpush3.bf16.msra.mxu1 %v1353_v54  ;;  %887 = vmatpush1.bf16.msra.mxu0 %v1370_v1  ;;  %v1402_v44 = vld [vmem:[%s1833_s5 + $0x11c] ss:$20 sps:$4 sm:$0xff]   ;;  %v1400_v45 = vld [vmem:[%s1833_s5 + $0x118] ss:$20 sps:$4 sm:$0xff]   ;;  %v1124_v49 = vld [vmem:[%s1832_s4] ss:$0 sm:$0xff]  ;;  %v649_v1 = vlaneseq }
  0x4a   :  { %1275 = vmatprep.subr.bf16.mxu1 %v1458_v35  ;;  %888 = vmatprep.subr.bf16.mxu0 %v1378_v2  ;;  %v1405_v46 = vld [vmem:[%s1833_s5 + $0x124] ss:$20 sps:$4 sm:$0xff]   ;;  %v1408_v59 = vld [vmem:[%s1833_s5 + $0x60] ss:$20 sps:$4 sm:$0xff]   ;;  %v1409_v60 = vld [vmem:[%s1833_s5 + $0x88] ss:$20 sps:$4 sm:$0xff]  }
  0x4b   :  { %v1411_v62 = vld [vmem:[%s1833_s5 + $0xd8] ss:$20 sps:$4 sm:$0xff]   ;;  %v1412_v63 = vld [vmem:[%s1833_s5 + $0x100] ss:$20 sps:$4 sm:$0xff]   ;;  %v1413_v0 = vld [vmem:[%s1833_s5 + $0x128] ss:$20 sps:$4 sm:$0xff]  }
  0x4c   :  { %v650_v2 = vshrl.u32 %v649_v1, 7 }
  0x4d   :  { %1276 = vmatpush3.bf16.msra.mxu1 %v1354_v55  ;;  %889 = vmatpush1.bf16.msra.mxu0 %v1376_v3 }
  0x4e   :  { %1277 = vmatprep.subr.bf16.mxu1 %v1458_v35  ;;  %890 = vmatprep.subr.bf16.mxu0 %v1384_v4  ;;  %v651_v3 = vsub.s32 0, %v650_v2  ;;  %v659_v4 = vsub.s32 2, %v650_v2 }
  0x51   :  { %1278 = vmatpush3.bf16.msra.mxu1 %v1355_v56  ;;  %891 = vmatpush1.bf16.msra.mxu0 %v1382_v5  ;;  %v1406_v56 = vld [vmem:[%s1833_s5 + $0x10] ss:$20 sps:$4 sm:$0xff]  }
  0x52   :  { %1279 = vmatprep.subr.bf16.mxu1 %v1458_v35  ;;  %892 = vmatprep.subr.bf16.mxu0 %v1390_v6  ;;  %v647_v5 = vld [vmem:[%s1834_s6] sm:$0x1f]  ;;  %v655_v6 = vsub.s32 1, %v650_v2 }
  0x55   :  { %1280 = vmatpush3.bf16.msra.mxu1 %v1356_v57  ;;  %893 = vmatpush1.bf16.msra.mxu0 %v1388_v7  ;;  %v663_v7 = vsub.s32 3, %v650_v2 }
  0x56   :  { %1281 = vmatprep.subr.bf16.mxu1 %v1458_v35  ;;  %894 = vmatprep.subr.bf16.mxu0 %v1396_v8  ;;  %v652_v8 = vrot.slane %v647_v5, %v651_v3 }
  0x59   :  { %1282 = vmatpush3.bf16.msra.mxu1 %v1357_v58  ;;  %895 = vmatpush1.bf16.msra.mxu0 %v1394_v9  ;;  %v1407_v58 = vld [vmem:[%s1833_s5 + $0x38] ss:$20 sps:$4 sm:$0xff]   ;;  %v660_v9 = vrot.slane %v647_v5, %v659_v4 }
  0x5a   :  { %923 = vmatprep.subr.bf16.mxu1 %v1363_v61  ;;  %896 = vmatprep.subr.bf16.mxu0 %v1402_v44  ;;  %v1410_v61 = vld [vmem:[%s1833_s5 + $0xb0] ss:$20 sps:$4 sm:$0xff]   ;;  %v667_v44 = vsub.s32 4, %v650_v2  ;;  %s1461_s5 = smov [#allocation2]  }
  0x5b   :  { %s1075_s6 = sshll.u32 %s1461_s5, 4  ;;  %s1076_s6 = int_to_ptr.vmem [resolvable:$true] %s1075_s6 }
  0x5c   :  { %s1434_s16 = scalar_lea.vmem %s1076_s6, 320  ;;  %p1439_p1 = scmp.lt.s32.totalorder %s1076_s6, %s1076_s6 }
  0x5d   :  { %897 = vmatpush1.bf16.msra.mxu0 %v1400_v45  ;;  %v668_v45 = vrot.slane %v647_v5, %v667_v44  ;;  %p1435_p0 = scmp.ne.s32.totalorder %s1076_s6, %s1434_s16  ;;  %p1440_p2 = scmp.lt.s32.totalorder %s1434_s16, %s1434_s16 }
  0x5e   :  { %1287 = vmatprep.subr.bf16.mxu0 %v1458_v35 }
  0x5f   :  { %p1441_p3 = por %p1440_p2, %p1439_p1 }
  0x61   :  { %p1442_p4 = pnand %p1441_p3, %p1435_p0 }
  0xf5   :  { %v1195_v10 = vpop.f32.mrb[0].mxu0 }
  0xf6   :  { %v1196_v12 = vpop.f32.mrb[1].mxu0 }
  0xf7   :  { %v1197_v13 = vadd.f32 %v1196_v12, %v1195_v10  ;;  %v1198_v14 = vpop.f32.mrb[2].mxu0  ;;  %v1217_v15 = vpop.f32.mrb[0].mxu1  ;;  %v656_v10 = vrot.slane %v647_v5, %v655_v6 }
  0xf8   :  { %v1199_v16 = vpop.f32.mrb[3].mxu0  ;;  %v1218_v17 = vpop.f32.mrb[1].mxu1 }
  0xf9   :  { %v399_v18 = vadd.f32 %v1197_v13, %v1083_v11  ;;  %v1219_v19 = vadd.f32 %v1218_v17, %v1217_v15  ;;  %v1220_v20 = vpop.f32.mrb[2].mxu1  ;;  %v664_v11 = vrot.slane %v647_v5, %v663_v7 }
  0xfa   :  { %v1221_v21 = vpop.f32.mrb[3].mxu1 }
  0xfb   :  { %v439_v22 = vadd.f32 %v1219_v19, %v399_v18 }
 0x111   :  { %v478_v23 = vpop.f32.mrb[4].mxu0 }
 0x112   :  { %v479_v24 = vadd.f32 %v478_v23, %v439_v22  ;;  %v1265_v25 = vpop.f32.mrb[5].mxu0 }
 0x113   :  { %v481_v26 = vpop.f32.mrb[6].mxu0 }
 0x114   :  { %v484_v27 = vmax.f32 %v479_v24, 0.0  ;;  %v1266_v28 = vpop.f32.mrb[7].mxu0 }
 0x116   :  { %v485_v30 = vpack.c.bf16 %v484_v27, %v484_v27 }
 0x118   :  { %1284 = vmatmul.mubr.bf16.vlgmr.msra.gmra.mrb[4].mxu1 %v485_v30 }
 0x119   :  { %924 = vmatpush1.bf16.msra.mxu1 %v1361_v29  ;;  %955 = vmatprep.mubr.bf16.mxu1 %v1460_v48 }
 0x11a   :  { %925 = vmatprep.subr.bf16.mxu1 %v1369_v31 }
 0x11d   :  { %926 = vmatpush1.bf16.msra.mxu1 %v1367_v32 }
 0x11e   :  { %927 = vmatprep.subr.bf16.mxu1 %v1375_v33 }
 0x121   :  { %928 = vmatpush1.bf16.msra.mxu1 %v1373_v34 }
 0x122   :  { %929 = vmatprep.subr.bf16.mxu1 %v1381_v36 }
 0x125   :  { %930 = vmatpush1.bf16.msra.mxu1 %v1379_v37 }
 0x126   :  { %931 = vmatprep.subr.bf16.mxu1 %v1387_v38 }
 0x129   :  { %932 = vmatpush1.bf16.msra.mxu1 %v1385_v39 }
 0x12a   :  { %933 = vmatprep.subr.bf16.mxu1 %v1393_v40 }
 0x12d   :  { %934 = vmatpush1.bf16.msra.mxu1 %v1391_v41 }
 0x12e   :  { %935 = vmatprep.subr.bf16.mxu1 %v1399_v42 }
 0x131   :  { %936 = vmatpush1.bf16.msra.mxu1 %v1397_v43 }
 0x132   :  { %937 = vmatprep.subr.bf16.mxu1 %v1405_v46 }
 0x135   :  { %938 = vmatpush1.bf16.msra.mxu1 %v1403_v47 }
 0x1eb   :  { %v591_v50 = vpop.f32.mrb[4].mxu1 }
 0x1ec   :  { %v592_v51 = vadd.f32 %v1124_v49, %v591_v50  ;;  %v1285_v52 = vpop.f32.mrb[5].mxu1 }
 0x1ed   :  { %v594_v53 = vpop.f32.mrb[6].mxu1 }
 0x1ee   :  { %v597_v54 = vmax.f32 %v592_v51, 0.0  ;;  %v1286_v55 = vpop.f32.mrb[7].mxu1 }
 0x1f0   :  { %v598_v57 = vpack.c.bf16 %v597_v54, %v597_v54 }
 0x1f2   :  { %915 = vmatmul.mubr.bf16.vlgmr.msra.gmra.mrb[8].mxu0 %v598_v57  ;;  %956 = vmatmul.mubr.bf16.vlgmr.msra.gmra.mrb[8].mxu1 %v598_v57 }
 0x1f3   :  { %1288 = vmatpush3.bf16.msra.mxu0 %v1406_v56  ;;  %1303 = vmatprep.mubr.msk.bf16.mxu0 %vm1459_vm0, %v1458_v35 }
 0x1f4   :  { %1289 = vmatprep.subr.bf16.mxu0 %v1458_v35 }
 0x1f7   :  { %1290 = vmatpush3.bf16.msra.mxu0 %v1407_v58 }
 0x1f8   :  { %1291 = vmatprep.subr.bf16.mxu0 %v1458_v35 }
 0x1fb   :  { %1292 = vmatpush3.bf16.msra.mxu0 %v1408_v59 }
 0x1fc   :  { %1293 = vmatprep.subr.bf16.mxu0 %v1458_v35 }
 0x1ff   :  { %1294 = vmatpush3.bf16.msra.mxu0 %v1409_v60 }
 0x200   :  { %1295 = vmatprep.subr.bf16.mxu0 %v1458_v35 }
 0x203   :  { %1296 = vmatpush3.bf16.msra.mxu0 %v1410_v61 }
 0x204   :  { %1297 = vmatprep.subr.bf16.mxu0 %v1458_v35 }
 0x207   :  { %1298 = vmatpush3.bf16.msra.mxu0 %v1411_v62 }
 0x208   :  { %1299 = vmatprep.subr.bf16.mxu0 %v1458_v35 }
 0x20b   :  { %1300 = vmatpush3.bf16.msra.mxu0 %v1412_v63 }
 0x20c   :  { %1301 = vmatprep.subr.bf16.mxu0 %v1458_v35 }
 0x20f   :  { %1302 = vmatpush3.bf16.msra.mxu0 %v1413_v0 }
 0x212   :  { %1304 = vmatmul.mubr.bf16.vlgmr.msra.gmra.mrb[12].mxu0 %v598_v57 }
 0x2c5   :  { %v916_v12 = vpop.f32.mrb[8].mxu0  ;;  %v957_v13 = vpop.f32.mrb[8].mxu1 }
 0x2c6   :  { %v917_v14 = vadd.f32 %v916_v12, %v652_v8  ;;  %v958_v35 = vadd.f32 %v957_v13, %v660_v9  ;;  %v918_v15 = vpop.f32.mrb[9].mxu0  ;;  %v959_v16 = vpop.f32.mrb[9].mxu1 }
 0x2c7   :  { %v919_v17 = vadd.f32 %v918_v15, %v656_v10  ;;  %v960_v18 = vadd.f32 %v959_v16, %v664_v11  ;;  %v920_v19 = vpop.f32.mrb[10].mxu0  ;;  %v961_v20 = vpop.f32.mrb[10].mxu1 }
 0x2c8   :  { %v1004_v21 = vmax.f32 %v917_v14, -30.0  ;;  %v1006_v22 = vmax.f32 %v958_v35, -30.0  ;;  %v921_v23 = vpop.f32.mrb[11].mxu0  ;;  %v962_v24 = vpop.f32.mrb[11].mxu1 }
 0x2c9   :  { %v1005_v25 = vmax.f32 %v919_v17, -30.0  ;;  %v1007_v26 = vmax.f32 %v960_v18, -30.0 }
 0x2ca   :  { %v1009_v27 = vsub.f32 0.0, %v1004_v21  ;;  %v1011_v28 = vsub.f32 0.0, %v1006_v22 }
 0x2cb   :  { %v1010_v29 = vsub.f32 0.0, %v1005_v25  ;;  %v1012_v30 = vsub.f32 0.0, %v1007_v26 }
 0x2cc   :  { %v1014_v31 = vmul.f32 1.442695, %v1009_v27  ;;  %v1018_v32 = vmul.f32 1.442695, %v1011_v28 }
 0x2cd   :  { %v1016_v33 = vmul.f32 1.442695, %v1010_v29  ;;  %v1020_v34 = vmul.f32 1.442695, %v1012_v30 }
 0x2ce   :  { %1414 = vpow2.f32 %v1014_v31 }
 0x2cf   :  { %1416 = vpow2.f32 %v1018_v32 }
 0x2d0   :  { %1418 = vpow2.f32 %v1016_v33 }
 0x2d1   :  { %1420 = vpow2.f32 %v1020_v34 }
 0x2d8   :  { %v1415_v36 = vpop.eup %1414 }
 0x2d9   :  { %v1417_v37 = vpop.eup %1416  ;;  %v1024_v38 = vadd.f32 1.0, %v1415_v36 }
 0x2da   :  { %v1419_v39 = vpop.eup %1418  ;;  %v1026_v40 = vadd.f32 1.0, %v1417_v37 }
 0x2db   :  { %v1421_v41 = vpop.eup %1420  ;;  %1422 = vrcp.f32 %v1024_v38  ;;  %v1025_v42 = vadd.f32 1.0, %v1419_v39 }
 0x2dc   :  { %1424 = vrcp.f32 %v1026_v40  ;;  %v1027_v43 = vadd.f32 1.0, %v1421_v41 }
 0x2dd   :  { %1426 = vrcp.f32 %v1025_v42 }
 0x2de   :  { %1428 = vrcp.f32 %v1027_v43 }
 0x2e5   :  { %v1423_v46 = vpop.eup %1422  ;;  %v998_v47 = vpop.f32.mrb[12].mxu0 }
 0x2e6   :  { %v1425_v48 = vpop.eup %1424  ;;  %v1034_v49 = vmul.f32 0.06981317, %v1423_v46  ;;  %v999_v50 = vadd.f32 %v998_v47, %v668_v45  ;;  %v1305_v51 = vpop.f32.mrb[13].mxu0 }
 0x2e7   :  { %v1427_v52 = vpop.eup %1426  ;;  %v1036_v53 = vmul.f32 0.06981317, %v1425_v48  ;;  %v1001_v54 = vpop.f32.mrb[14].mxu0 }
 0x2e8   :  { %v1429_v55 = vpop.eup %1428  ;;  %v1035_v56 = vmul.f32 0.06981317, %v1427_v52  ;;  %v1008_v57 = vmax.f32 %v999_v50, -30.0  ;;  %v1306_v58 = vpop.f32.mrb[15].mxu0  ;;  %v1039_v59 = vadd.f32 0.034906585, %v1034_v49 }
 0x2e9   :  { %v1037_v60 = vmul.f32 0.06981317, %v1429_v55  ;;  %v1041_v61 = vadd.f32 0.034906585, %v1036_v53 }
 0x2ea   :  { %v1013_v62 = vsub.f32 0.0, %v1008_v57  ;;  %v1040_v63 = vadd.f32 0.034906585, %v1035_v56 }
 0x2eb   :  { %v1042_v0 = vadd.f32 0.034906585, %v1037_v60 }
 0x2ec   :  { %v1022_v1 = vmul.f32 1.442695, %v1013_v62  ;;  %v1176_v2 = vpack.c.bf16 %v1040_v63, %v1039_v59 }
 0x2ed   :  { %v1177_v3 = vpack.c.bf16 %v1042_v0, %v1041_v61 }
 0x2ee   :  { %1430 = vpow2.f32 %v1022_v1  ;;  %1065 = vst [vmem:[#allocation2] sm:$0xff] %v1176_v2 }
 0x2ef   :  { %1066 = vst [vmem:[#allocation2 + $0x8] sm:$0xff] %v1177_v3 }
 0x2f8   :  { %v1431_v4 = vpop.eup %1430 }
 0x2f9   :  { %v1028_v5 = vadd.f32 1.0, %v1431_v4 }
 0x2fb   :  { %1432 = vrcp.f32 %v1028_v5 }
 0x305   :  { %v1433_v6 = vpop.eup %1432 }
 0x306   :  { %v1038_v7 = vmul.f32 0.06981317, %v1433_v6 }
 0x308   :  { %v1043_v8 = vadd.f32 0.034906585, %v1038_v7 }
 0x30a   :  { %v1178_v9 = vpack.c.bf16 %v1043_v8, %v1043_v8 }
 0x30c   :  { %1068 = vst.msk [vmem:[#allocation2 + $0x10] sm:$0xf] %vm1067_vm3, %v1178_v9 }
 0x30d   :  { %1445 = shalt.err (!%p1442_p4)
}
 0x30e   :  { %s1446_s2 = scalar_lea.hbm %s1835_s7, 320 }
 0x30f   :  { %p1447_p5 = scmp.ne.s32.totalorder %s1835_s7, %s1446_s2  ;;  %p1450_p6 = scmp.lt.u32.totalorder %s1446_s2, %s1835_s7 }
 0x311   :  { %p1452_p7 = pnand %p1450_p6, %p1447_p5 }
 0x313   :  { %1455 = shalt.err (!%p1452_p7)
}
 0x314   :  { %1078 = dma.vmem_to_hbm [thread:$0]  %s1076_s6, 320, %s1835_s7, [#allocation3]  }
 0x315   :  { %1456 = dma.done.wait [#allocation3], 320  }
 0x316   :  { %1457 = vsyncadd [#allocation3], 4294966976 }
 0x317   :  { %1082 = vsyncpa [#allocation3], 1 }

</bundles_post_ra>
